<compile_context>
chip_gen: v5e
topology: v5e:2x2
jax: 0.10.0
libtpu: 0.0.40
codegen_flags: <defaults>
</compile_context>

<pallas_src>
import functools
import math

import jax
import jax.numpy as jnp
from jax import lax
from jax.experimental import pallas as pl
from jax.experimental.pallas import tpu as pltpu

# ---- module hyper-parameters (from attentionb.__init__ defaults) ----
DIMS = 32
HEAD = 4
HEAD_DIM = DIMS // HEAD
MAX_ITER = 3
THRESHOLD = 0.01
FACTOR = 0.1
TEMP_BASE = 1.0
MIN_SIZE = 64
MAX_SIZE = 2048
UP_WIN = 1.1
DOWN_WIN = 0.9
UP_DIFF = 0.05
DOWN_DIFF = 0.001
LN_EPS = 1e-5

TQ_TILE_MAX = 256     # query-row tile inside the focus kernel
KV_BUCKET = 256       # key/value window bucket (bounds #compiled variants)
ROW_TILE_MAX = 1024   # row tile for the (LN+)projection kernel
NEG_INF = -1e30


def _round_up(x, m):
    return ((x + m - 1) // m) * m


# =====================================================================
# Row-tiled (LayerNorm +) Linear kernel.
#   LN weights are pre-folded into the weights; n_out separate lane-contiguous
#   outputs (q/k/v) so there is no host-side slicing of a fused slab.
# =====================================================================

def _make_rows_proj_kernel(n_out, apply_ln):
    def kernel(x_ref, w_ref, b_ref, *o_refs):
        x = x_ref[...]
        if apply_ln:
            mu = jnp.mean(x, axis=-1, keepdims=True)
            var = jnp.mean((x - mu) ** 2, axis=-1, keepdims=True)
            x = (x - mu) * lax.rsqrt(var + LN_EPS)
        for i in range(n_out):
            o_refs[i][...] = (jnp.dot(x, w_ref[i],
                                      preferred_element_type=jnp.float32)
                              + b_ref[i])
    return kernel


@functools.lru_cache(maxsize=None)
def _build_rows_proj(n_pad, rb, din, dout, n_out, apply_ln):
    call = pl.pallas_call(
        _make_rows_proj_kernel(n_out, apply_ln),
        out_shape=tuple(jax.ShapeDtypeStruct((n_pad, dout), jnp.float32)
                        for _ in range(n_out)),
        grid=(n_pad // rb,),
        in_specs=[
            pl.BlockSpec((rb, din), lambda i: (i, 0)),
            pl.BlockSpec((n_out, din, dout), lambda i: (0, 0, 0)),
            pl.BlockSpec((n_out, 1, dout), lambda i: (0, 0, 0)),
        ],
        out_specs=tuple(pl.BlockSpec((rb, dout), lambda i: (i, 0))
                        for _ in range(n_out)),
        compiler_params=pltpu.CompilerParams(
            dimension_semantics=("parallel",)),
    )
    return jax.jit(call)


def rows_project(x2d, w_stack, b_stack, *, apply_ln):
    """x2d: (N, Din); w_stack: (n_out, Din, Dout); b_stack: (n_out, 1, Dout)."""
    n, din = x2d.shape
    n_out, _, dout = w_stack.shape
    rb = min(ROW_TILE_MAX, _round_up(n, 8))
    n_pad = _round_up(n, rb)
    if n_pad != n:
        x2d = jnp.pad(x2d, ((0, n_pad - n), (0, 0)))
    fn = _build_rows_proj(n_pad, rb, din, dout, n_out, apply_ln)
    outs = fn(x2d, w_stack, b_stack)
    if n_pad != n:
        outs = tuple(o[:n] for o in outs)
    return tuple(outs)


# =====================================================================
# One focus iteration.
#   grid = (B, Tq_pad // TQ);  eq/ek come in via scalar prefetch (no recompile
#   when the window changes); K/V blocks cover only the bucketed window rows
#   and are resident across the q-tile axis.
#   outputs: iter_out (zero outside the eq window), qcur+iter_out, and a
#   per-(b, q-tile) |iter_out - prev| partial sum (blocked, 8x128).
# =====================================================================

def _focus_iter_kernel(scal_ref, qcur_ref, prev_ref, k_ref, v_ref,
                       wq_ref, bq_ref, wk_ref, bk_ref, wv_ref, bv_ref,
                       lnc_ref, lnd_ref, g_ref,
                       iter_ref, qnew_ref, diff_ref):
    eq = scal_ref[0]
    ek = scal_ref[1]
    qt = pl.program_id(1)
    tq = qcur_ref.shape[1]
    d = qcur_ref.shape[2]
    row0 = qt * tq

    qcur = qcur_ref[0]          # (TQ, D)
    prev = prev_ref[0]          # (TQ, D)

    def write(out):
        # fused: windowed writeback + residual qcur update + diff partial sum
        iter_ref[0] = out
        qnew_ref[0] = qcur + out
        dsum = jnp.sum(jnp.abs(out - prev))
        diff_ref[...] = jnp.broadcast_to(dsum, diff_ref.shape)

    @pl.when(row0 < eq)
    def _():
        kwin = k_ref[0]         # (EKp, D)
        vwin = v_ref[0]
        ekp = kwin.shape[0]
        g = g_ref[...]          # (D, D) block group-mean matrix

        # LocalOut per-head projections as block-diagonal (D, D) matmuls (f32).
        qp = jnp.dot(qcur, wq_ref[...],
                     preferred_element_type=jnp.float32) + bq_ref[...]
        kp = jnp.dot(kwin, wk_ref[...],
                     preferred_element_type=jnp.float32) + bk_ref[...]
        vp = jnp.dot(vwin, wv_ref[...],
                     preferred_element_type=jnp.float32) + bv_ref[...]

        def grouped_ln(z, w_eff):
            # per-head LayerNorm over head_dim columns; group mean via G matmul
            mu = jnp.dot(z, g, preferred_element_type=jnp.float32)
            c = z - mu
            var = jnp.dot(c * c, g, preferred_element_type=jnp.float32)
            return c * lax.rsqrt(var + LN_EPS) * w_eff

        # lnc_ref already carries lnc_w * (1/temp)**0.5 * hd**-0.5
        qn_b = grouped_ln(qp, lnc_ref[...]).astype(jnp.bfloat16)   # (TQ, D)
        kn_t = grouped_ln(kp, lnd_ref[...]).T.astype(jnp.bfloat16)  # (D, EKp)

        col_head = lax.broadcasted_iota(jnp.int32, (1, d), 1) // HEAD_DIM
        key_ok = lax.broadcasted_iota(jnp.int32, (1, ekp), 1) < ek   # (1, EKp)
        row_ok = (row0 + lax.broadcasted_iota(jnp.int32, (tq, 1), 0)) < eq

        def head_body(h, acc):
            maskh = col_head == h                               # (1, D)
            qh = qn_b * maskh                                   # bf16, head h cols
            s = jnp.dot(qh, kn_t,
                        preferred_element_type=jnp.float32)     # (TQ, EKp) f32
            s = jnp.where(key_ok, s, NEG_INF)                   # mask padded keys
            m = jnp.max(s, axis=-1, keepdims=True)
            p = jnp.exp(s - m)
            l = jnp.sum(p, axis=-1, keepdims=True)
            vh = (vp * maskh).astype(jnp.bfloat16)              # (EKp, D)
            pv = jnp.dot(p.astype(jnp.bfloat16), vh,
                         preferred_element_type=jnp.float32)    # (TQ, D)
            return acc + pv / l                                 # exact divide

        out = lax.fori_loop(0, HEAD, head_body,
                            jnp.zeros((tq, d), jnp.float32))
        out = jnp.where(row_ok, out, 0.0)   # rows outside the focus window
        write(out)

    @pl.when(row0 >= eq)
    def _():
        # whole q-tile is outside the window: pure pass-through
        write(jnp.zeros((tq, d), jnp.float32))


@functools.lru_cache(maxsize=None)
def _build_focus_iteration(batch, tq_pad, tk_pad, ek_pad, dims, tq_tile):
    del tk_pad  # shape of k/v operands; jit specializes on it anyway
    n_qt = tq_pad // tq_tile
    q_spec = pl.BlockSpec((1, tq_tile, dims), lambda b, qt, s: (b, qt, 0))
    kv_spec = pl.BlockSpec((1, ek_pad, dims), lambda b, qt, s: (b, 0, 0))
    w_spec = pl.BlockSpec((dims, dims), lambda b, qt, s: (0, 0))
    vec_spec = pl.BlockSpec((1, dims), lambda b, qt, s: (0, 0))

    grid_spec = pltpu.PrefetchScalarGridSpec(
        num_scalar_prefetch=1,
        grid=(batch, n_qt),
        in_specs=[
            q_spec,             # qcur
            q_spec,             # prev_out
            kv_spec,            # k_full (only the first ek_pad rows fetched)
            kv_spec,            # v_full
            w_spec, vec_spec,   # LocalOut q (block-diag) + bias
            w_spec, vec_spec,   # LocalOut k + bias
            w_spec, vec_spec,   # LocalOut v + bias
            vec_spec,           # lnc_eff (incl. temp & 1/sqrt(hd) scales)
            vec_spec,           # lnd
            w_spec,             # group-mean matrix G
        ],
        out_specs=(
            q_spec,             # iter_out
            q_spec,             # qcur + iter_out
            pl.BlockSpec((1, 1, 8, 128), lambda b, qt, s: (b, qt, 0, 0)),
        ),
    )
    call = pl.pallas_call(
        _focus_iter_kernel,
        out_shape=(
            jax.ShapeDtypeStruct((batch, tq_pad, dims), jnp.float32),
            jax.ShapeDtypeStruct((batch, tq_pad, dims), jnp.float32),
            jax.ShapeDtypeStruct((batch, n_qt, 8, 128), jnp.float32),
        ),
        grid_spec=grid_spec,
        compiler_params=pltpu.CompilerParams(
            dimension_semantics=("parallel", "parallel"),
            vmem_limit_bytes=32 * 1024 * 1024),
    )
    return jax.jit(call)


# =====================================================================
# Parameters (deterministic synthetic init, shapes from qkv_init/LocalOut)
# =====================================================================

def init_params(key):
    ks = jax.random.split(key, 16)

    def lin_w(k, din, dout):
        bound = 1.0 / math.sqrt(din)
        # stored pre-transposed: (din, dout) so kernels compute x @ W_t
        return jax.random.uniform(k, (din, dout), jnp.float32, -bound, bound)

    def lin_b(k, din, dout):
        bound = 1.0 / math.sqrt(din)
        return jax.random.uniform(k, (1, dout), jnp.float32, -bound, bound)

    return {
        # top-level q/k/v/o linears (dims -> dims); k has no bias
        "wq_t": lin_w(ks[0], DIMS, DIMS), "bq": lin_b(ks[1], DIMS, DIMS),
        "wk_t": lin_w(ks[2], DIMS, DIMS), "bk": jnp.zeros((1, DIMS), jnp.float32),
        "wv_t": lin_w(ks[3], DIMS, DIMS), "bv": lin_b(ks[4], DIMS, DIMS),
        "wo_t": lin_w(ks[5], DIMS, DIMS), "bo": lin_b(ks[6], DIMS, DIMS),
        # LayerNorms (bias=False -> weight only, init ones like PyTorch)
        "lna_w": jnp.ones((1, DIMS), jnp.float32),
        "lnb_w": jnp.ones((1, DIMS), jnp.float32),
        "lnc_w": jnp.ones((1, HEAD_DIM), jnp.float32),
        "lnd_w": jnp.ones((1, HEAD_DIM), jnp.float32),
        # LocalOut per-head linears (head_dim -> head_dim)
        "lwq_t": lin_w(ks[7], HEAD_DIM, HEAD_DIM), "lbq": lin_b(ks[8], HEAD_DIM, HEAD_DIM),
        "lwk_t": lin_w(ks[9], HEAD_DIM, HEAD_DIM), "lbk": lin_b(ks[10], HEAD_DIM, HEAD_DIM),
        "lwv_t": lin_w(ks[11], HEAD_DIM, HEAD_DIM), "lbv": lin_b(ks[12], HEAD_DIM, HEAD_DIM),
    }


def prepare_params(p):
    """One-time host-side folding of LN weights / constants into matmul weights."""
    scale = HEAD_DIM ** (-0.25)
    # fold lna/lnb (row scaling) and the hd**-0.25 head scale into q/k/v weights
    # (the scale survives through the LocalOut biases exactly as in PyTorch)
    wq = p["lna_w"].reshape(DIMS, 1) * p["wq_t"] * scale
    bq = p["bq"] * scale
    wk = p["lnb_w"].reshape(DIMS, 1) * p["wk_t"] * scale
    bk = p["bk"] * scale
    wv = p["lnb_w"].reshape(DIMS, 1) * p["wv_t"]
    bv = p["bv"]
    eye_h = jnp.eye(HEAD, dtype=jnp.float32)
    return {
        # stacked projection weights (n_out, Din, Dout) -> separate q/k/v outputs
        "w_qkv": jnp.stack([wq, wk, wv]), "b_qkv": jnp.stack([bq, bk, bv]),
        "w_q": wq[None], "b_q": bq[None],
        "w_kv": jnp.stack([wk, wv]), "b_kv": jnp.stack([bk, bv]),
        "w_o": p["wo_t"][None], "b_o": p["bo"][None],
        # LocalOut per-head linears as block-diagonal (D, D) weights
        "lwq_bd": jnp.kron(eye_h, p["lwq_t"]), "lbq_t": jnp.tile(p["lbq"], (1, HEAD)),
        "lwk_bd": jnp.kron(eye_h, p["lwk_t"]), "lbk_t": jnp.tile(p["lbk"], (1, HEAD)),
        "lwv_bd": jnp.kron(eye_h, p["lwv_t"]), "lbv_t": jnp.tile(p["lbv"], (1, HEAD)),
        # per-head LN weights tiled to width D
        "lnc_t": jnp.tile(p["lnc_w"], (1, HEAD)),
        "lnd_t": jnp.tile(p["lnd_w"], (1, HEAD)),
        # group-mean matrix: (z @ G)[:, h*hd+j] = mean of head h's columns of z
        "g_mat": jnp.kron(eye_h, jnp.full((HEAD_DIM, HEAD_DIM),
                                          1.0 / HEAD_DIM, jnp.float32)),
    }


# =====================================================================
# Forward (mirrors attentionb._focus; default forward path)
# =====================================================================

def _next_win(diff, current_size, max_len):
    new_size = current_size
    if diff > UP_DIFF:
        new_size = int(current_size * UP_WIN)
    elif diff < DOWN_DIFF and current_size > MIN_SIZE:
        new_size = int(current_size * DOWN_WIN)
    return max(MIN_SIZE, min(new_size, max_len))


def attentionb_forward(params, x, xa=None):
    # TODO(synk): mask / is_causal path and use_sliding_win=True path are not
    # implemented; default forward (use_sliding_win=False, mask=None) only.
    wp = prepare_params(params)
    B, Tq, D = x.shape
    x2 = x.reshape(B * Tq, D)

    if xa is None:
        Tk = Tq
        qf, kf, vf = rows_project(x2, wp["w_qkv"], wp["b_qkv"], apply_ln=True)
        q_full = qf.reshape(B, Tq, D)
        k_full = kf.reshape(B, Tk, D)
        v_full = vf.reshape(B, Tk, D)
    else:
        Tk = xa.shape[1]
        s2 = xa.reshape(B * Tk, D)
        (qf,) = rows_project(x2, wp["w_q"], wp["b_q"], apply_ln=True)
        kf, vf = rows_project(s2, wp["w_kv"], wp["b_kv"], apply_ln=True)
        q_full = qf.reshape(B, Tq, D)
        k_full = kf.reshape(B, Tk, D)
        v_full = vf.reshape(B, Tk, D)

    # pad the time axes once; all focus-iteration shapes stay fixed afterwards
    tq_tile = min(TQ_TILE_MAX, _round_up(Tq, 8))
    tq_pad = _round_up(Tq, tq_tile)
    tk_pad = _round_up(Tk, 8)
    if tq_pad != Tq:
        q_full = jnp.pad(q_full, ((0, 0), (0, tq_pad - Tq), (0, 0)))
    if tk_pad != Tk:
        k_full = jnp.pad(k_full, ((0, 0), (0, tk_pad - Tk), (0, 0)))
        v_full = jnp.pad(v_full, ((0, 0), (0, tk_pad - Tk), (0, 0)))

    temp = TEMP_BASE
    prev_out = jnp.zeros((B, tq_pad, D), jnp.float32)
    attn_out = jnp.zeros((B, tq_pad, D), jnp.float32)
    qcur = q_full
    cur_win = min(Tq, Tk, MAX_SIZE)
    cur_win = max(cur_win, MIN_SIZE)

    inv_sqrt_hd = 1.0 / math.sqrt(HEAD_DIM)
    denom = float(B * Tq * D)

    iteration = 0
    while iteration < MAX_ITER:
        if cur_win == 0:
            break
        eq = min(cur_win, Tq)
        ek = min(cur_win, Tk)
        # bucketed window length -> a handful of compiled variants, ever
        ek_pad = min(tk_pad, _round_up(ek, KV_BUCKET))

        qscale = 1.0
        if temp != 1.0 and temp > 0:
            qscale = (1.0 / temp) ** 0.5
        # fold temp scaling and the SDPA 1/sqrt(hd) scale into the lnc weight
        lnc_eff = wp["lnc_t"] * (qscale * inv_sqrt_hd)

        scal = jnp.array([eq, ek], jnp.int32)
        fn = _build_focus_iteration(B, tq_pad, tk_pad, ek_pad, D, tq_tile)
        iter_out, qcur_new, dparts = fn(
            scal, qcur, prev_out, k_full, v_full,
            wp["lwq_bd"], wp["lbq_t"], wp["lwk_bd"], wp["lbk_t"],
            wp["lwv_bd"], wp["lbv_t"], lnc_eff, wp["lnd_t"], wp["g_mat"])

        # intentional host sync per iteration (matches the reference .item())
        diff = float(jnp.sum(dparts[:, :, 0, 0])) / denom
        dthresh = THRESHOLD + FACTOR * diff
        if diff < dthresh and iteration > 0:
            attn_out = iter_out
            break
        prev_out = iter_out
        qcur = qcur_new
        attn_out = iter_out
        cur_win = _next_win(diff, cur_win, min(Tq, Tk))
        iteration += 1
        temp += 0.005

    # flat (B, T, D) layout == permute(0,2,1,3).flatten(2) already
    out2 = attn_out[:, :Tq, :].reshape(B * Tq, D)
    (out,) = rows_project(out2, wp["w_o"], wp["b_o"], apply_ln=False)
    return out.reshape(B, Tq, D)


# =====================================================================
if __name__ == "__main__":
    key = jax.random.PRNGKey(0)
    pkey, xkey = jax.random.split(key)
    params = init_params(pkey)

    B, T = 2, 8
    x = jax.random.normal(xkey, (B, T, DIMS), dtype=jnp.float32)

    out = attentionb_forward(params, x)
    out = jax.block_until_ready(out)

    assert out.shape == (B, T, DIMS), out.shape
    assert bool(jnp.all(jnp.isfinite(out)))
    print("KERNEL_OK")
</pallas_src>

<mosaic_0001>
module attributes {stable_mosaic.version = 11 : i64} {
  func.func @kernel(%arg0: i32, %arg1: memref<16x32xf32, #tpu.memory_space<vmem>>, %arg2: memref<3x32x32xf32, #tpu.memory_space<vmem>>, %arg3: memref<3x1x32xf32, #tpu.memory_space<vmem>>, %arg4: memref<16x32xf32, #tpu.memory_space<vmem>>, %arg5: memref<16x32xf32, #tpu.memory_space<vmem>>, %arg6: memref<16x32xf32, #tpu.memory_space<vmem>>) attributes {dimension_semantics = [#tpu.dimension_semantics<parallel>], iteration_bounds = array<i64: 1>, scalar_prefetch = 0 : i64, scratch_operands = 0 : i64, tpu.core_type = #tpu.core_type<tc>, window_params = [{transform_indices = @transform_0, window_bounds = array<i64: 16, 32>}, {pipeline_mode = #tpu.pipeline_mode<synchronous>, transform_indices = @transform_1, window_bounds = array<i64: 3, 32, 32>}, {pipeline_mode = #tpu.pipeline_mode<synchronous>, transform_indices = @transform_2, window_bounds = array<i64: 3, 1, 32>}, {transform_indices = @transform_3, window_bounds = array<i64: 16, 32>}, {transform_indices = @transform_4, window_bounds = array<i64: 16, 32>}, {transform_indices = @transform_5, window_bounds = array<i64: 16, 32>}]} {
    %c0 = arith.constant 0 : index
    %c0_0 = arith.constant 0 : index
    %0 = vector.load %arg1[%c0, %c0_0] : memref<16x32xf32, #tpu.memory_space<vmem>>, vector<16x32xf32>
    %cst = arith.constant dense<0.000000e+00> : vector<16xf32>
    %1 = vector.multi_reduction <add>, %0, %cst [1] : vector<16x32xf32> to vector<16xf32>
    %2 = vector.shape_cast %1 : vector<16xf32> to vector<16x1xf32>
    %cst_1 = arith.constant 3.200000e+01 : f32
    %3 = vector.broadcast %cst_1 : f32 to vector<16x1xf32>
    %4 = arith.divf %2, %3 : vector<16x1xf32>
    %5 = vector.broadcast %4 : vector<16x1xf32> to vector<16x32xf32>
    %6 = arith.subf %0, %5 : vector<16x32xf32>
    %7 = arith.mulf %6, %6 : vector<16x32xf32>
    %cst_2 = arith.constant dense<0.000000e+00> : vector<16xf32>
    %8 = vector.multi_reduction <add>, %7, %cst_2 [1] : vector<16x32xf32> to vector<16xf32>
    %9 = vector.shape_cast %8 : vector<16xf32> to vector<16x1xf32>
    %cst_3 = arith.constant 3.200000e+01 : f32
    %10 = vector.broadcast %cst_3 : f32 to vector<16x1xf32>
    %11 = arith.divf %9, %10 : vector<16x1xf32>
    %12 = vector.broadcast %4 : vector<16x1xf32> to vector<16x32xf32>
    %13 = arith.subf %0, %12 : vector<16x32xf32>
    %cst_4 = arith.constant 9.99999974E-6 : f32
    %14 = vector.broadcast %cst_4 : f32 to vector<16x1xf32>
    %15 = arith.addf %11, %14 : vector<16x1xf32>
    %16 = math.rsqrt %15 : vector<16x1xf32>
    %17 = vector.broadcast %16 : vector<16x1xf32> to vector<16x32xf32>
    %18 = arith.mulf %13, %17 : vector<16x32xf32>
    %c0_5 = arith.constant 0 : index
    %c0_6 = arith.constant 0 : index
    %c0_7 = arith.constant 0 : index
    %19 = vector.load %arg2[%c0_5, %c0_6, %c0_7] : memref<3x32x32xf32, #tpu.memory_space<vmem>>, vector<1x32x32xf32>
    %20 = vector.shape_cast %19 : vector<1x32x32xf32> to vector<32x32xf32>
    %cst_8 = arith.constant dense<0.000000e+00> : vector<16x32xf32>
    %21 = tpu.matmul %18, %20, %cst_8 {dimension_numbers = #tpu.dot_dimension_numbers<[1], [0], [0], [1], [0, 0, 1, 1], [], []>} : vector<16x32xf32>, vector<32x32xf32>, vector<16x32xf32> -> vector<16x32xf32>
    %c0_9 = arith.constant 0 : index
    %c0_10 = arith.constant 0 : index
    %c0_11 = arith.constant 0 : index
    %22 = vector.load %arg3[%c0_9, %c0_10, %c0_11] : memref<3x1x32xf32, #tpu.memory_space<vmem>>, vector<1x1x32xf32>
    %23 = vector.shape_cast %22 : vector<1x1x32xf32> to vector<1x32xf32>
    %24 = vector.broadcast %23 : vector<1x32xf32> to vector<16x32xf32>
    %25 = arith.addf %21, %24 : vector<16x32xf32>
    %c0_12 = arith.constant 0 : index
    %c0_13 = arith.constant 0 : index
    %26 = vector.load %arg4[%c0_12, %c0_13] : memref<16x32xf32, #tpu.memory_space<vmem>>, vector<16x32xf32>
    tpu.vector_store %arg4[%c0_12, %c0_13], %25 {strides = array<i32>} : memref<16x32xf32, #tpu.memory_space<vmem>>, vector<16x32xf32>,
    %c1 = arith.constant 1 : index
    %c0_14 = arith.constant 0 : index
    %c0_15 = arith.constant 0 : index
    %27 = vector.load %arg2[%c1, %c0_14, %c0_15] : memref<3x32x32xf32, #tpu.memory_space<vmem>>, vector<1x32x32xf32>
    %28 = vector.shape_cast %27 : vector<1x32x32xf32> to vector<32x32xf32>
    %cst_16 = arith.constant dense<0.000000e+00> : vector<16x32xf32>
    %29 = tpu.matmul %18, %28, %cst_16 {dimension_numbers = #tpu.dot_dimension_numbers<[1], [0], [0], [1], [0, 0, 1, 1], [], []>} : vector<16x32xf32>, vector<32x32xf32>, vector<16x32xf32> -> vector<16x32xf32>
    %c1_17 = arith.constant 1 : index
    %c0_18 = arith.constant 0 : index
    %c0_19 = arith.constant 0 : index
    %30 = vector.load %arg3[%c1_17, %c0_18, %c0_19] : memref<3x1x32xf32, #tpu.memory_space<vmem>>, vector<1x1x32xf32>
    %31 = vector.shape_cast %30 : vector<1x1x32xf32> to vector<1x32xf32>
    %32 = vector.broadcast %31 : vector<1x32xf32> to vector<16x32xf32>
    %33 = arith.addf %29, %32 : vector<16x32xf32>
    %c0_20 = arith.constant 0 : index
    %c0_21 = arith.constant 0 : index
    %34 = vector.load %arg5[%c0_20, %c0_21] : memref<16x32xf32, #tpu.memory_space<vmem>>, vector<16x32xf32>
    tpu.vector_store %arg5[%c0_20, %c0_21], %33 {strides = array<i32>} : memref<16x32xf32, #tpu.memory_space<vmem>>, vector<16x32xf32>,
    %c2 = arith.constant 2 : index
    %c0_22 = arith.constant 0 : index
    %c0_23 = arith.constant 0 : index
    %35 = vector.load %arg2[%c2, %c0_22, %c0_23] : memref<3x32x32xf32, #tpu.memory_space<vmem>>, vector<1x32x32xf32>
    %36 = vector.shape_cast %35 : vector<1x32x32xf32> to vector<32x32xf32>
    %cst_24 = arith.constant dense<0.000000e+00> : vector<16x32xf32>
    %37 = tpu.matmul %18, %36, %cst_24 {dimension_numbers = #tpu.dot_dimension_numbers<[1], [0], [0], [1], [0, 0, 1, 1], [], []>} : vector<16x32xf32>, vector<32x32xf32>, vector<16x32xf32> -> vector<16x32xf32>
    %c2_25 = arith.constant 2 : index
    %c0_26 = arith.constant 0 : index
    %c0_27 = arith.constant 0 : index
    %38 = vector.load %arg3[%c2_25, %c0_26, %c0_27] : memref<3x1x32xf32, #tpu.memory_space<vmem>>, vector<1x1x32xf32>
    %39 = vector.shape_cast %38 : vector<1x1x32xf32> to vector<1x32xf32>
    %40 = vector.broadcast %39 : vector<1x32xf32> to vector<16x32xf32>
    %41 = arith.addf %37, %40 : vector<16x32xf32>
    %c0_28 = arith.constant 0 : index
    %c0_29 = arith.constant 0 : index
    %42 = vector.load %arg6[%c0_28, %c0_29] : memref<16x32xf32, #tpu.memory_space<vmem>>, vector<16x32xf32>
    tpu.vector_store %arg6[%c0_28, %c0_29], %41 {strides = array<i32>} : memref<16x32xf32, #tpu.memory_space<vmem>>, vector<16x32xf32>,
    return
  }
  func.func @transform_0(%arg0: i32) -> (i32, i32) {
    %c0_i32 = arith.constant 0 : i32
    %c0_i32_0 = arith.constant 0 : i32
    return %arg0, %c0_i32 : i32, i32
  }
  func.func @transform_1(%arg0: i32) -> (i32, i32, i32) {
    %c0_i32 = arith.constant 0 : i32
    %c0_i32_0 = arith.constant 0 : i32
    %c0_i32_1 = arith.constant 0 : i32
    %c0_i32_2 = arith.constant 0 : i32
    return %c0_i32, %c0_i32_0, %c0_i32_1 : i32, i32, i32
  }
  func.func @transform_2(%arg0: i32) -> (i32, i32, i32) {
    %c0_i32 = arith.constant 0 : i32
    %c0_i32_0 = arith.constant 0 : i32
    %c0_i32_1 = arith.constant 0 : i32
    %c0_i32_2 = arith.constant 0 : i32
    return %c0_i32, %c0_i32_0, %c0_i32_1 : i32, i32, i32
  }
  func.func @transform_3(%arg0: i32) -> (i32, i32) {
    %c0_i32 = arith.constant 0 : i32
    %c0_i32_0 = arith.constant 0 : i32
    return %arg0, %c0_i32 : i32, i32
  }
  func.func @transform_4(%arg0: i32) -> (i32, i32) {
    %c0_i32 = arith.constant 0 : i32
    %c0_i32_0 = arith.constant 0 : i32
    return %arg0, %c0_i32 : i32, i32
  }
  func.func @transform_5(%arg0: i32) -> (i32, i32) {
    %c0_i32 = arith.constant 0 : i32
    %c0_i32_0 = arith.constant 0 : i32
    return %arg0, %c0_i32 : i32, i32
  }
}

</mosaic_0001>

<bundles_post_ra>
// kernel: tpu_custom_call.1
= control target key start
LH: loop header
LB: loop body
LE: loop exit
PB: predicated region body
PF: predicated region fallthrough
CT: control target
= control target key end

     0   :  { %11 = vsyncpa [#allocation3], 0  ;;  %s561_s0 = inlined_call_operand.hbm [shape: f32[16,32], index: 0, kind: input, shape index: {}]   ;;  %s562_s1 = inlined_call_operand.hbm [shape: f32[3,32,32], index: 1, kind: input, shape index: {}]   ;;  %s563_s2 = inlined_call_operand.hbm [shape: f32[3,1,32], index: 2, kind: input, shape index: {}]   ;;  %s564_s3 = inlined_call_operand.hbm [shape: f32[16,32], index: 3, kind: output, shape index: {0}]   ;;  %s565_s4 = inlined_call_operand.hbm [shape: f32[16,32], index: 4, kind: output, shape index: {1}]   ;;  %s566_s5 = inlined_call_operand.hbm [shape: f32[16,32], index: 5, kind: output, shape index: {2}]  }
   0x1   :  { %12 = vsyncpa [#allocation6], 0 }
   0x2   :  { %13 = vsyncpa [#allocation4], 0 }
   0x3   :  { %14 = vsyncpa [#allocation10], 0  ;;  %s32_s20 = sshll.u32 %s562_s1, 4  ;;  %s466_s21 = smov [#allocation5]   ;;  %s33_s20 = int_to_ptr.hbm [resolvable:$true] %s32_s20 }
   0x4   :  { %s34_s22 = sshll.u32 %s466_s21, 4  ;;  %s19_s25 = sshll.u32 %s561_s0, 4  ;;  %s35_s22 = int_to_ptr.vmem [resolvable:$true] %s34_s22  ;;  %s20_s25 = int_to_ptr.hbm [resolvable:$true] %s19_s25 }
   0x5   :  { %s467_s26 = smov 128   ;;  %s468_s27 = smov 8  }
   0x6   :  { %40 = dma.hbm_to_vmem [thread:$0]  %s33_s20, 1536, %s35_s22, [#allocation6], %s467_s26, %s467_s26, %s468_s27  }
   0x7   :  { %s469_s28 = smov [#allocation2]   ;;  %s45_s1 = sshll.u32 %s563_s2, 4  ;;  %s46_s1 = int_to_ptr.hbm [resolvable:$true] %s45_s1 }
   0x8   :  { %s21_s29 = sshll.u32 %s469_s28, 4  ;;  %s470_s0 = smov [#allocation7]   ;;  %s22_s29 = int_to_ptr.vmem [resolvable:$true] %s21_s29 }
   0x9   :  { %27 = dma.hbm_to_vmem [thread:$0]  %s20_s25, 256, %s22_s29, [#allocation3], %s467_s26, %s467_s26, %s468_s27  }
   0xa   :  { %s47_s7 = sshll.u32 %s470_s0, 4  ;;  %s471_s8 = smov 16   ;;  %s48_s7 = int_to_ptr.vmem [resolvable:$true] %s47_s7 }
   0xb   :  { %s472_s9 = smov 1  }
   0xc   :  { %53 = dma.hbm_to_vmem [thread:$0]  %s46_s1, 48, %s48_s7, [#allocation6], %s471_s8, %s471_s8, %s472_s9  }
   0xd   :  { %458 = dma.done.wait [#allocation3], 256  }
   0xe   :  { %459 = vsyncadd [#allocation3], 4294967040 }
   0xf   :  { %460 = dma.done.wait [#allocation6], 1584  }
  0x10   :  { %461 = vsyncadd [#allocation6], 4294965712  ;;  %vm68_vm0 = vcmask 261120   ;;  %v66_v0 = vld [vmem:[#allocation2] sm:$0xff]  ;;  %v67_v2 = vld [vmem:[#allocation2 + $0x8] sm:$0xff]  ;;  %v473_v4 = vmov 32.0  }
  0x11   :  { %v69_v1 = vsel %vm68_vm0, %v66_v0, 0.0  ;;  %v72_v3 = vsel %vm68_vm0, %v67_v2, 0.0  ;;  %308 = vrcp.f32 %v473_v4  ;;  %v123_v21 = vld [vmem:[#allocation5 + $0x18] sm:$0xff]  ;;  %v122_v24 = vld [vmem:[#allocation5 + $0x10] sm:$0xff]  ;;  %v121_v27 = vld [vmem:[#allocation5 + $0x8] sm:$0xff]  ;;  %s474_s2 = smov [#allocation9]  }
  0x12   :  { %70 = vadd.xlane.f32.xlu0 %v69_v1  ;;  %v163_v22 = vld [vmem:[#allocation5 + $0x38] sm:$0xff]  ;;  %146 = vmatpush.msra.mxu0 %v123_v21  ;;  %v162_v25 = vld [vmem:[#allocation5 + $0x30] sm:$0xff]  ;;  %v161_v28 = vld [vmem:[#allocation5 + $0x28] sm:$0xff]  ;;  %s246_s10 = sshll.u32 %s474_s2, 4  ;;  %s248_s13 = sshll.u32 %s565_s4, 4  ;;  %s247_s10 = int_to_ptr.vmem [resolvable:$true] %s246_s10  ;;  %s249_s13 = int_to_ptr.hbm [resolvable:$true] %s248_s13 }
  0x13   :  { %v198_v23 = vld [vmem:[#allocation5 + $0x58] sm:$0xff]  ;;  %181 = vmatpush.msra.mxu1 %v163_v22  ;;  %v197_v26 = vld [vmem:[#allocation5 + $0x50] sm:$0xff]  ;;  %290 = vmatpush.msra.mxu3 %v123_v21  ;;  %v196_v29 = vld [vmem:[#allocation5 + $0x48] sm:$0xff]  ;;  %s475_s14 = smov [#allocation8]   ;;  %s235_s18 = sshll.u32 %s564_s3, 4  ;;  %s236_s18 = int_to_ptr.hbm [resolvable:$true] %s235_s18 }
  0x14   :  { %216 = vmatpush.msra.mxu2 %v198_v23  ;;  %147 = vmatpush.msra.mxu0 %v122_v24  ;;  %v120_v30 = vld [vmem:[#allocation5] sm:$0xff]  ;;  %s233_s15 = sshll.u32 %s475_s14, 4  ;;  %s476_s4 = smov [#allocation11]   ;;  %s234_s15 = int_to_ptr.vmem [resolvable:$true] %s233_s15 }
  0x15   :  { %182 = vmatpush.msra.mxu1 %v162_v25  ;;  %291 = vmatpush.msra.mxu3 %v122_v24  ;;  %v160_v31 = vld [vmem:[#allocation5 + $0x20] sm:$0xff]  ;;  %s259_s19 = sshll.u32 %s476_s4, 4  ;;  %s261_s22 = sshll.u32 %s566_s5, 4  ;;  %s260_s19 = int_to_ptr.vmem [resolvable:$true] %s259_s19  ;;  %s262_s22 = int_to_ptr.hbm [resolvable:$true] %s261_s22 }
  0x16   :  { %217 = vmatpush.msra.mxu2 %v197_v26  ;;  %148 = vmatpush.msra.mxu0 %v121_v27  ;;  %v195_v32 = vld [vmem:[#allocation5 + $0x40] sm:$0xff] }
  0x17   :  { %v309_v5 = vpop.eup %308  ;;  %183 = vmatpush.msra.mxu1 %v161_v28  ;;  %292 = vmatpush.msra.mxu3 %v121_v27  ;;  %v305_v55 = vld [vmem:[#allocation7] ss:$0 sm:$0xff]  ;;  %v306_v56 = vld [vmem:[#allocation7 + $0x1] ss:$0 sm:$0xff]  ;;  %v307_v61 = vld [vmem:[#allocation7 + $0x2] ss:$0 sm:$0xff] }
  0x18   :  { %v76_v6 = vmul.f32 32.0, %v309_v5  ;;  %vm80_vm1 = vweird.f32 %v309_v5  ;;  %218 = vmatpush.msra.mxu2 %v196_v29  ;;  %149 = vmatpush.msra.mxu0 %v120_v30 }
  0x19   :  { %184 = vmatpush.msra.mxu1 %v160_v31  ;;  %293 = vmatpush.msra.mxu3 %v120_v30 }
  0x1a   :  { %73 = vadd.xlane.f32.xlu0 %v72_v3  ;;  %v77_v7 = vsub.f32 1.0, %v76_v6  ;;  %219 = vmatpush.msra.mxu2 %v195_v32 }
  0x1c   :  { %v78_v8 = vmul.f32 %v309_v5, %v77_v7 }
  0x1e   :  { %v79_v9 = vadd.f32 %v309_v5, %v78_v8 }
  0x20   :  { %v81_v10 = vsel %vm80_vm1, %v309_v5, %v79_v9 }
  0x85   :  { %v71_v11 = vpop.xlane.xlu0 %70 }
  0x86   :  { %v82_v12 = vmul.f32 %v81_v10, %v71_v11 }
  0x88   :  { %v84_v13 = vsub.f32 %v66_v0, %v82_v12 }
  0x8a   :  { %v86_v14 = vmul.f32 %v84_v13, %v84_v13 }
  0x8c   :  { %v88_v15 = vsel %vm68_vm0, %v86_v14, 0.0 }
  0x8d   :  { %89 = vadd.xlane.f32.xlu1 %v88_v15  ;;  %v74_v16 = vpop.xlane.xlu0 %73 }
  0x8e   :  { %v83_v17 = vmul.f32 %v81_v10, %v74_v16 }
  0x90   :  { %v525_v18 = vsub.f32 %v67_v2, %v83_v17 }
  0x92   :  { %v87_v19 = vmul.f32 %v525_v18, %v525_v18 }
  0x94   :  { %v91_v20 = vsel %vm68_vm0, %v87_v19, 0.0 }
  0x95   :  { %92 = vadd.xlane.f32.xlu1 %v91_v20 }
 0x100   :  { %v90_v33 = vpop.xlane.xlu1 %89 }
 0x101   :  { %v94_v34 = vmul.f32 %v90_v33, %v81_v10 }
 0x103   :  { %v96_v35 = vadd.f32 1e-05, %v94_v34 }
 0x105   :  { %310 = vrsqrt.f32 %v96_v35  ;;  %vm104_vm3 = vweird.f32 %v96_v35 }
 0x108   :  { %v93_v36 = vpop.xlane.xlu1 %92 }
 0x109   :  { %v95_v37 = vmul.f32 %v93_v36, %v81_v10 }
 0x10b   :  { %v311_v38 = vpop.eup %310  ;;  %v97_v39 = vadd.f32 1e-05, %v95_v37 }
 0x10c   :  { %v99_v40 = vmul.f32 %v311_v38, %v96_v35  ;;  %vm105_vm2 = vweird.f32 %v311_v38 }
 0x10d   :  { %312 = vrsqrt.f32 %v97_v39  ;;  %vm106_vm4 = vmor %vm104_vm3, %vm105_vm2  ;;  %vm114_vm6 = vweird.f32 %v97_v39 }
 0x10e   :  { %v100_v41 = vmul.f32 %v311_v38, %v99_v40 }
 0x110   :  { %v101_v42 = vmul.f32 0.5, %v100_v41 }
 0x112   :  { %v102_v43 = vsub.f32 1.5, %v101_v42 }
 0x113   :  { %v313_v44 = vpop.eup %312 }
 0x114   :  { %v109_v45 = vmul.f32 %v313_v44, %v97_v39  ;;  %v103_v46 = vmul.f32 %v311_v38, %v102_v43  ;;  %vm115_vm5 = vweird.f32 %v313_v44 }
 0x115   :  { %vm116_vm7 = vmor %vm114_vm6, %vm115_vm5 }
 0x116   :  { %v110_v47 = vmul.f32 %v313_v44, %v109_v45  ;;  %v107_v48 = vsel %vm106_vm4, %v311_v38, %v103_v46 }
 0x117   :  { %v118_v49 = vmul.f32 %v107_v48, %v84_v13 }
 0x118   :  { %v111_v50 = vmul.f32 0.5, %v110_v47 }
 0x119   :  { %284 = vmatmul.msk.f32.vlgmr.msra.gmra.mxu0 %vm68_vm0, %v118_v49  ;;  %286 = vmatmul.msk.f32.vlgmr.msra.gmra.mxu1 %vm68_vm0, %v118_v49 }
 0x11a   :  { %v112_v51 = vsub.f32 1.5, %v111_v50  ;;  %288 = vmatmul.msk.f32.vlgmr.msra.gmra.mxu2 %vm68_vm0, %v118_v49 }
 0x11c   :  { %v113_v52 = vmul.f32 %v313_v44, %v112_v51 }
 0x11e   :  { %v117_v53 = vsel %vm116_vm7, %v313_v44, %v113_v52 }
 0x11f   :  { %v119_v54 = vmul.f32 %v117_v53, %v525_v18 }
 0x121   :  { %285 = vmatmul.msk.f32.vlgmr.msra.gmra.mxu3 %vm68_vm0, %v119_v54  ;;  %287 = vmatmul.msk.f32.gmra.mxu1 %vm68_vm0, %v119_v54 }
 0x122   :  { %289 = vmatmul.msk.f32.gmra.mxu2 %vm68_vm0, %v119_v54 }
 0x196   :  { %v151_v57 = vpop.f32.mrf.mxu0  ;;  %v186_v58 = vpop.f32.mrf.mxu1 }
 0x197   :  { %v152_v59 = vadd.f32 %v305_v55, %v151_v57  ;;  %v187_v60 = vadd.f32 %v306_v56, %v186_v58 }
 0x199   :  { %157 = vst.msk [vmem:[#allocation8] sm:$0xff] %vm68_vm0, %v152_v59 }
 0x19a   :  { %192 = vst.msk [vmem:[#allocation9] sm:$0xff] %vm68_vm0, %v187_v60 }
 0x19d   :  { %v221_v62 = vpop.f32.mrf.mxu2 }
 0x19e   :  { %v222_v63 = vadd.f32 %v307_v61, %v221_v62  ;;  %v189_v0 = vpop.f32.mrf.mxu1 }
 0x19f   :  { %v190_v1 = vadd.f32 %v306_v56, %v189_v0 }
 0x1a0   :  { %227 = vst.msk [vmem:[#allocation11] sm:$0xff] %vm68_vm0, %v222_v63 }
 0x1a1   :  { %193 = vst.msk [vmem:[#allocation9 + $0x8] sm:$0xff] %vm68_vm0, %v190_v1 }
 0x1a2   :  { %254 = dma.vmem_to_hbm [thread:$0]  %s247_s10, 256, %s249_s13, [#allocation10], %s467_s26, %s467_s26, %s468_s27  }
 0x1a4   :  { %v154_v2 = vpop.f32.mrf.mxu3 }
 0x1a5   :  { %v155_v3 = vadd.f32 %v305_v55, %v154_v2  ;;  %v224_v4 = vpop.f32.mrf.mxu2 }
 0x1a6   :  { %v225_v5 = vadd.f32 %v307_v61, %v224_v4 }
 0x1a7   :  { %158 = vst.msk [vmem:[#allocation8 + $0x8] sm:$0xff] %vm68_vm0, %v155_v3 }
 0x1a8   :  { %228 = vst.msk [vmem:[#allocation11 + $0x8] sm:$0xff] %vm68_vm0, %v225_v5  ;;  %241 = dma.vmem_to_hbm [thread:$0]  %s234_s15, 256, %s236_s18, [#allocation4], %s467_s26, %s467_s26, %s468_s27  }
 0x1a9   :  { %267 = dma.vmem_to_hbm [thread:$0]  %s260_s19, 256, %s262_s22, [#allocation10], %s467_s26, %s467_s26, %s468_s27  }
 0x1aa   :  { %462 = dma.done.wait [#allocation4], 256  }
 0x1ab   :  { %463 = vsyncadd [#allocation4], 4294967040 }
 0x1ac   :  { %464 = dma.done.wait [#allocation10], 512  }
 0x1ad   :  { %465 = vsyncadd [#allocation10], 4294966784 }
 0x1ae   :  { %280 = vsyncpa [#allocation3], 1 }
 0x1af   :  { %281 = vsyncpa [#allocation6], 1 }
 0x1b0   :  { %282 = vsyncpa [#allocation4], 1 }
 0x1b1   :  { %283 = vsyncpa [#allocation10], 1 }

</bundles_post_ra>
